<compile_context>
chip_gen: v7x
topology: tpu7x:2x2x1
jax: 0.10.0
libtpu: 0.0.40
codegen_flags: <defaults>
</compile_context>

<pallas_src>
import functools

import jax
import jax.numpy as jnp
from jax.experimental import pallas as pl
from jax.experimental.pallas import tpu as pltpu

LANE = 128


def _round_up(n, m):
    return ((n + m - 1) // m) * m


def _sublane(dtype):
    # Minimum second-minor tile multiple for a dtype (f32: 8, bf16: 16, int8/fp8: 32).
    return max(8, 32 // jnp.dtype(dtype).itemsize)


@functools.lru_cache(maxsize=None)
def _single_buffer_supported():
    """Probe whether pipeline_mode=pl.Buffered(1) lowers (and is correct) on this build."""
    def _copy(i_ref, o_ref):
        o_ref[...] = i_ref[...]

    try:
        x = jnp.arange(8 * 128, dtype=jnp.float32).reshape(8, 128)
        fn = pl.pallas_call(
            _copy,
            out_shape=jax.ShapeDtypeStruct((8, 128), jnp.float32),
            grid=(2,),
            in_specs=[pl.BlockSpec((8, 128), lambda i: (0, 0),
                                   pipeline_mode=pl.Buffered(1))],
            out_specs=pl.BlockSpec((8, 128), lambda i: (0, 0)),
        )
        return bool(jnp.array_equal(jax.block_until_ready(fn(x)), x))
    except Exception:
        return False


def _mlp_kernel(x_ref, w1_ref, w2_ref, b1_ref, b2_ref, out_ref, hid_ref):
    # fc1 on the MXU with f32 accumulation. The streamed x tile is cast to the compute
    # dtype on the VPU here, so the wrapper never materializes a cast copy of x in HBM.
    x = x_ref[...].astype(w1_ref.dtype)
    h = jnp.dot(x, w1_ref[...], preferred_element_type=jnp.float32)
    h = jnp.maximum(h + b1_ref[...], 0.0)          # f32 bias + ReLU on the VPU

    # The stored hidden is exactly what fc2 consumes (bf16-rounded in bf16 compute mode).
    h_c = h.astype(hid_ref.dtype)
    hid_ref[...] = h_c

    # fc2 on the MXU, f32 accumulation; bias add + final cast on the VPU.
    o = jnp.dot(h_c.astype(w2_ref.dtype), w2_ref[...],
                preferred_element_type=jnp.float32)
    out_ref[...] = (o + b2_ref[...]).astype(out_ref.dtype)


def prepare_params(w1, b1, w2, b2, *, compute_dtype=None):
    """Build the lane-dense padded parameter set ONCE (hoisted out of the per-call path).

    w1: (In, H); b1: (H,); w2: (H, O); b2: (O,)  (nn.Linear weights pre-transposed).
    compute_dtype: optional dtype (e.g. jnp.bfloat16) for the MXU operands; accumulation
                   and biases stay float32.
    """
    In, H = w1.shape
    H2, O = w2.shape
    assert H2 == H
    cdt = jnp.dtype(w1.dtype if compute_dtype is None else compute_dtype)
    Hp = _round_up(H, LANE)
    Op = _round_up(O, LANE)
    w1p = jnp.zeros((In, Hp), cdt).at[:, :H].set(w1.astype(cdt))
    w2p = jnp.zeros((Hp, Op), cdt).at[:H, :O].set(w2.astype(cdt))
    b1p = jnp.zeros((1, Hp), jnp.float32).at[0, :H].set(b1.astype(jnp.float32))
    b2p = jnp.zeros((1, Op), jnp.float32).at[0, :O].set(b2.astype(jnp.float32))
    return {"w1": w1p, "b1": b1p, "w2": w2p, "b2": b2p, "H": int(H), "O": int(O)}


@functools.partial(
    jax.jit,
    static_argnames=("h_dim", "o_dim", "block_batch", "single_buffer_weights"),
)
def _forward_impl(x, w1p, b1p, w2p, b2p, *, h_dim, o_dim, block_batch,
                  single_buffer_weights):
    B, In = x.shape
    Hp = w1p.shape[1]
    Op = w2p.shape[1]
    orig_dtype = x.dtype
    cdt = w1p.dtype

    # Hidden writeback is the largest HBM stream: store it in the narrower compute dtype
    # when one is in use (bf16 halves its bytes); out stays in the input dtype.
    hid_dtype = (cdt if jnp.dtype(cdt).itemsize < jnp.dtype(orig_dtype).itemsize
                 else orig_dtype)

    # Batch tiling: n_tiles tiles of TB rows (TB a sublane multiple), chosen to minimize
    # padded-row waste. block_batch=512 collapses demo-scale batches to one grid step.
    sub = max(_sublane(orig_dtype), _sublane(hid_dtype), _sublane(cdt))
    n_tiles = max(1, pl.cdiv(B, block_batch))
    TB = _round_up(pl.cdiv(B, n_tiles), sub)
    Bp = n_tiles * TB
    xp = x if Bp == B else jnp.zeros((Bp, In), orig_dtype).at[:B].set(x)

    # Explicit VMEM budget: double-buffered x / out / hidden tiles, single- (or double-)
    # buffered grid-invariant weights & biases, plus headroom.
    nb_w = 1 if single_buffer_weights else 2
    est = (2 * TB * In * jnp.dtype(orig_dtype).itemsize
           + nb_w * (In * Hp + Hp * Op) * jnp.dtype(cdt).itemsize
           + nb_w * (Hp + Op) * 4
           + 2 * TB * Op * jnp.dtype(orig_dtype).itemsize
           + 2 * TB * Hp * jnp.dtype(hid_dtype).itemsize)
    vmem_limit = int(min(max(2 * est + (8 << 20), 32 << 20), 96 << 20))

    # Grid-invariant operands do not need double buffers.
    const_kw = {"pipeline_mode": pl.Buffered(1)} if single_buffer_weights else {}

    out_p, hid_p = pl.pallas_call(
        _mlp_kernel,
        out_shape=(
            jax.ShapeDtypeStruct((Bp, Op), orig_dtype),
            jax.ShapeDtypeStruct((Bp, Hp), hid_dtype),
        ),
        grid=(n_tiles,),
        in_specs=[
            pl.BlockSpec((TB, In), lambda i: (i, 0)),              # streamed x tile
            pl.BlockSpec((In, Hp), lambda i: (0, 0), **const_kw),  # VMEM-resident w1
            pl.BlockSpec((Hp, Op), lambda i: (0, 0), **const_kw),  # VMEM-resident w2
            pl.BlockSpec((1, Hp), lambda i: (0, 0), **const_kw),   # b1 row
            pl.BlockSpec((1, Op), lambda i: (0, 0), **const_kw),   # b2 row
        ],
        out_specs=(
            pl.BlockSpec((TB, Op), lambda i: (i, 0)),   # lane-dense 128-multiple stores
            pl.BlockSpec((TB, Hp), lambda i: (i, 0)),
        ),
        compiler_params=pltpu.CompilerParams(
            dimension_semantics=("parallel",),          # megacore sharding on v7x
            vmem_limit_bytes=vmem_limit,
        ),
    )(xp, w1p, w2p, b1p, b2p)

    return out_p[:B, :o_dim], hid_p[:B, :h_dim]


def multimodal_forward(x, params, *, block_batch=512):
    """Forward pass of MultimodalModel: returns (fc2(relu(fc1(x))), relu(fc1(x)))."""
    return _forward_impl(
        x, params["w1"], params["b1"], params["w2"], params["b2"],
        h_dim=params["H"], o_dim=params["O"], block_batch=block_batch,
        single_buffer_weights=_single_buffer_supported(),
    )


def reference_forward(x, w1, b1, w2, b2):
    h = jnp.maximum(x @ w1 + b1, 0.0)
    return h @ w2 + b2, h


if __name__ == "__main__":
    # Shapes consistent with the module: Linear(input_size -> hidden_size -> output_size).
    batch, input_size, hidden_size, output_size = 8, 32, 64, 16

    key = jax.random.PRNGKey(0)
    kx, kw1, kb1, kw2, kb2 = jax.random.split(key, 5)

    # Deterministic parameters (nn.Linear shapes), stored pre-transposed as (in, out).
    w1 = jax.random.normal(kw1, (input_size, hidden_size), jnp.float32) * 0.1
    b1 = jax.random.normal(kb1, (hidden_size,), jnp.float32) * 0.1
    w2 = jax.random.normal(kw2, (hidden_size, output_size), jnp.float32) * 0.1
    b2 = jax.random.normal(kb2, (output_size,), jnp.float32) * 0.1

    # Padded / lane-dense parameters built once (hoisted out of the per-call path).
    params_f32 = prepare_params(w1, b1, w2, b2)
    params_bf16 = prepare_params(w1, b1, w2, b2, compute_dtype=jnp.bfloat16)

    # 1) Small batch, f32, single grid step.
    x = jax.random.normal(kx, (batch, input_size), jnp.float32)
    out, hid = multimodal_forward(x, params_f32)
    jax.block_until_ready((out, hid))
    ref_out, ref_hid = reference_forward(x, w1, b1, w2, b2)
    assert out.shape == (batch, output_size) and hid.shape == (batch, hidden_size)
    assert jnp.allclose(out, ref_out, atol=1e-5, rtol=1e-5)
    assert jnp.allclose(hid, ref_hid, atol=1e-5, rtol=1e-5)

    # 2) Multi-tile grid (awkward batch size), f32.
    x2 = jax.random.normal(kx, (200, input_size), jnp.float32)
    out2, hid2 = multimodal_forward(x2, params_f32, block_batch=64)
    jax.block_until_ready((out2, hid2))
    ref_out2, ref_hid2 = reference_forward(x2, w1, b1, w2, b2)
    assert jnp.allclose(out2, ref_out2, atol=1e-5, rtol=1e-5)
    assert jnp.allclose(hid2, ref_hid2, atol=1e-5, rtol=1e-5)

    # 3) bf16 compute on the MXU (f32 accumulation, bf16 hidden store), loose tolerance.
    out3, hid3 = multimodal_forward(x2, params_bf16, block_batch=64)
    jax.block_until_ready((out3, hid3))
    assert out3.dtype == jnp.float32 and hid3.dtype == jnp.bfloat16
    assert jnp.allclose(out3, ref_out2, atol=1e-1, rtol=1e-1)
    assert jnp.allclose(hid3.astype(jnp.float32), ref_hid2, atol=1e-1, rtol=1e-1)

    print("KERNEL_OK")
</pallas_src>

<mosaic_0001>
module attributes {stable_mosaic.version = 11 : i64} {
  func.func @_copy(%arg0: i32, %arg1: memref<8x128xf32, #tpu.memory_space<vmem>>, %arg2: memref<8x128xf32, #tpu.memory_space<vmem>>) attributes {dimension_semantics = [#tpu.dimension_semantics<arbitrary>], iteration_bounds = array<i64: 2>, scalar_prefetch = 0 : i64, scratch_operands = 0 : i64, tpu.core_type = #tpu.core_type<tc>, window_params = [{pipeline_mode = #tpu.pipeline_mode<synchronous>, transform_indices = @transform_0, window_bounds = array<i64: 8, 128>}, {pipeline_mode = #tpu.pipeline_mode<synchronous>, transform_indices = @transform_1, window_bounds = array<i64: 8, 128>}]} {
    %c0 = arith.constant 0 : index
    %c0_0 = arith.constant 0 : index
    %0 = vector.load %arg1[%c0, %c0_0] : memref<8x128xf32, #tpu.memory_space<vmem>>, vector<8x128xf32>
    %c0_1 = arith.constant 0 : index
    %c0_2 = arith.constant 0 : index
    %1 = vector.load %arg2[%c0_1, %c0_2] : memref<8x128xf32, #tpu.memory_space<vmem>>, vector<8x128xf32>
    tpu.vector_store %arg2[%c0_1, %c0_2], %0 {strides = array<i32>} : memref<8x128xf32, #tpu.memory_space<vmem>>, vector<8x128xf32>,
    return
  }
  func.func @transform_0(%arg0: i32) -> (i32, i32) {
    %c0_i32 = arith.constant 0 : i32
    %c0_i32_0 = arith.constant 0 : i32
    %c0_i32_1 = arith.constant 0 : i32
    return %c0_i32, %c0_i32_0 : i32, i32
  }
  func.func @transform_1(%arg0: i32) -> (i32, i32) {
    %c0_i32 = arith.constant 0 : i32
    %c0_i32_0 = arith.constant 0 : i32
    %c0_i32_1 = arith.constant 0 : i32
    return %c0_i32, %c0_i32_0 : i32, i32
  }
}

module attributes {stable_mosaic.version = 11 : i64} {
  func.func @_mlp_kernel(%arg0: i32, %arg1: memref<8x32xf32, #tpu.memory_space<vmem>>, %arg2: memref<32x128xf32, #tpu.memory_space<vmem>>, %arg3: memref<128x128xf32, #tpu.memory_space<vmem>>, %arg4: memref<1x128xf32, #tpu.memory_space<vmem>>, %arg5: memref<1x128xf32, #tpu.memory_space<vmem>>, %arg6: memref<8x128xf32, #tpu.memory_space<vmem>>, %arg7: memref<8x128xf32, #tpu.memory_space<vmem>>) attributes {dimension_semantics = [#tpu.dimension_semantics<parallel>], iteration_bounds = array<i64: 1>, scalar_prefetch = 0 : i64, scratch_operands = 0 : i64, tpu.core_type = #tpu.core_type<tc>, window_params = [{transform_indices = @transform_0, window_bounds = array<i64: 8, 32>}, {pipeline_mode = #tpu.pipeline_mode<synchronous>, transform_indices = @transform_1, window_bounds = array<i64: 32, 128>}, {pipeline_mode = #tpu.pipeline_mode<synchronous>, transform_indices = @transform_2, window_bounds = array<i64: 128, 128>}, {pipeline_mode = #tpu.pipeline_mode<synchronous>, transform_indices = @transform_3, window_bounds = array<i64: 1, 128>}, {pipeline_mode = #tpu.pipeline_mode<synchronous>, transform_indices = @transform_4, window_bounds = array<i64: 1, 128>}, {transform_indices = @transform_5, window_bounds = array<i64: 8, 128>}, {transform_indices = @transform_6, window_bounds = array<i64: 8, 128>}]} {
    %c0 = arith.constant 0 : index
    %c0_0 = arith.constant 0 : index
    %0 = vector.load %arg1[%c0, %c0_0] : memref<8x32xf32, #tpu.memory_space<vmem>>, vector<8x32xf32>
    %c0_1 = arith.constant 0 : index
    %c0_2 = arith.constant 0 : index
    %1 = vector.load %arg2[%c0_1, %c0_2] : memref<32x128xf32, #tpu.memory_space<vmem>>, vector<32x128xf32>
    %cst = arith.constant dense<0.000000e+00> : vector<8x128xf32>
    %2 = tpu.matmul %0, %1, %cst {dimension_numbers = #tpu.dot_dimension_numbers<[1], [0], [0], [1], [0, 0, 1, 1], [], []>} : vector<8x32xf32>, vector<32x128xf32>, vector<8x128xf32> -> vector<8x128xf32>
    %c0_3 = arith.constant 0 : index
    %c0_4 = arith.constant 0 : index
    %3 = vector.load %arg4[%c0_3, %c0_4] : memref<1x128xf32, #tpu.memory_space<vmem>>, vector<1x128xf32>
    %4 = vector.broadcast %3 : vector<1x128xf32> to vector<8x128xf32>
    %5 = arith.addf %2, %4 : vector<8x128xf32>
    %cst_5 = arith.constant 0.000000e+00 : f32
    %6 = vector.broadcast %cst_5 : f32 to vector<8x128xf32>
    %7 = arith.maximumf %5, %6 : vector<8x128xf32>
    %c0_6 = arith.constant 0 : index
    %c0_7 = arith.constant 0 : index
    %8 = vector.load %arg7[%c0_6, %c0_7] : memref<8x128xf32, #tpu.memory_space<vmem>>, vector<8x128xf32>
    tpu.vector_store %arg7[%c0_6, %c0_7], %7 {strides = array<i32>} : memref<8x128xf32, #tpu.memory_space<vmem>>, vector<8x128xf32>,
    %c0_8 = arith.constant 0 : index
    %c0_9 = arith.constant 0 : index
    %9 = vector.load %arg3[%c0_8, %c0_9] : memref<128x128xf32, #tpu.memory_space<vmem>>, vector<128x128xf32>
    %cst_10 = arith.constant dense<0.000000e+00> : vector<8x128xf32>
    %10 = tpu.matmul %7, %9, %cst_10 {dimension_numbers = #tpu.dot_dimension_numbers<[1], [0], [0], [1], [0, 0, 1, 1], [], []>} : vector<8x128xf32>, vector<128x128xf32>, vector<8x128xf32> -> vector<8x128xf32>
    %c0_11 = arith.constant 0 : index
    %c0_12 = arith.constant 0 : index
    %11 = vector.load %arg5[%c0_11, %c0_12] : memref<1x128xf32, #tpu.memory_space<vmem>>, vector<1x128xf32>
    %12 = vector.broadcast %11 : vector<1x128xf32> to vector<8x128xf32>
    %13 = arith.addf %10, %12 : vector<8x128xf32>
    %c0_13 = arith.constant 0 : index
    %c0_14 = arith.constant 0 : index
    %14 = vector.load %arg6[%c0_13, %c0_14] : memref<8x128xf32, #tpu.memory_space<vmem>>, vector<8x128xf32>
    tpu.vector_store %arg6[%c0_13, %c0_14], %13 {strides = array<i32>} : memref<8x128xf32, #tpu.memory_space<vmem>>, vector<8x128xf32>,
    return
  }
  func.func @transform_0(%arg0: i32) -> (i32, i32) {
    %c0_i32 = arith.constant 0 : i32
    %c0_i32_0 = arith.constant 0 : i32
    return %arg0, %c0_i32 : i32, i32
  }
  func.func @transform_1(%arg0: i32) -> (i32, i32) {
    %c0_i32 = arith.constant 0 : i32
    %c0_i32_0 = arith.constant 0 : i32
    %c0_i32_1 = arith.constant 0 : i32
    return %c0_i32, %c0_i32_0 : i32, i32
  }
  func.func @transform_2(%arg0: i32) -> (i32, i32) {
    %c0_i32 = arith.constant 0 : i32
    %c0_i32_0 = arith.constant 0 : i32
    %c0_i32_1 = arith.constant 0 : i32
    return %c0_i32, %c0_i32_0 : i32, i32
  }
  func.func @transform_3(%arg0: i32) -> (i32, i32) {
    %c0_i32 = arith.constant 0 : i32
    %c0_i32_0 = arith.constant 0 : i32
    %c0_i32_1 = arith.constant 0 : i32
    return %c0_i32, %c0_i32_0 : i32, i32
  }
  func.func @transform_4(%arg0: i32) -> (i32, i32) {
    %c0_i32 = arith.constant 0 : i32
    %c0_i32_0 = arith.constant 0 : i32
    %c0_i32_1 = arith.constant 0 : i32
    return %c0_i32, %c0_i32_0 : i32, i32
  }
  func.func @transform_5(%arg0: i32) -> (i32, i32) {
    %c0_i32 = arith.constant 0 : i32
    %c0_i32_0 = arith.constant 0 : i32
    return %arg0, %c0_i32 : i32, i32
  }
  func.func @transform_6(%arg0: i32) -> (i32, i32) {
    %c0_i32 = arith.constant 0 : i32
    %c0_i32_0 = arith.constant 0 : i32
    return %arg0, %c0_i32 : i32, i32
  }
}

</mosaic_0001>

<bundles_post_ra>
// kernel: tpu_custom_call.1
= control target key start
LH: loop header
LB: loop body
LE: loop exit
PB: predicated region body
PF: predicated region fallthrough
CT: control target
= control target key end

     0   :  { %6 = vsyncpa [#allocation3], 0  ;;  %s340_s0 = inlined_call_operand.hbm [shape: f32[8,128], index: 0, kind: input, shape index: {}]   ;;  %s341_s1 = inlined_call_operand.hbm [shape: f32[8,128], index: 1, kind: output, shape index: {}]  }
   0x1   :  { %7 = vsyncpa [#allocation4], 0  ;;  %s261_s6 = smov 0  }
   0x2 LB: > { %s144_s7 = sadd.s32 4294967295, %s247_s6   ;;  %p145_p0 = scmp.ge.s32.totalorder %s247_s6, 1  ;;  %s247_s6 = sphi %s261_s6, %s13_s6  }
   0x3   : > { %p60_p1 = scmp.lt.s32.totalorder %s247_s6, 3  ;;  %p275_p3 = scmp.eq.s32.totalorder %s144_s7, 0 }
   0x4   : > { %s249_s10 = smov [#allocation2]   ;;  %s179_s15 = scalar_lea.hbm %s340_s0, 128 }
   0x5   : > { %p269_p2 = pnand %p145_p0, %p60_p1  ;;  %s73_s11 = sshll.u32 %s249_s10, 4  ;;  %s74_s11 = int_to_ptr.vmem [resolvable:$true] %s73_s11 }
   0x6   : > { %s346_s9 = scalar_select %p275_p3, 1, 0 }
   0x7   : > { %s345_s8 = scalar_select %p269_p2, 1, 0 }
   0x8   : > { %p161_p4 = pneg %p269_p2  ;;  %p180_p6 = scmp.ne.s32.totalorder %s340_s0, %s179_s15 }
   0x9   : > { %p186_p10 = scmp.lt.u32.totalorder %s179_s15, %s340_s0 }
   0xa   : > { %p283_p5 = pnand %p275_p3, %p161_p4 }
   0xc   : > { %p181_p7 = pneg %p283_p5 }
   0xe   : > { %p182_p8 = pnand %p181_p7, %p180_p6 }
  0x10   : > { %p183_p9 = pneg %p182_p8 }
  0x12   : > { %p188_p11 = pnand %p186_p10, %p183_p9 }
  0x14   : > { %191 = shalt.err (!%p188_p11)
}
  0x15   : > { %s192_s20 = scalar_lea.vmem %s74_s11, 128  ;;  %p200_p1 = scmp.lt.s32.totalorder %s74_s11, %s74_s11 }
  0x16   : > { %p193_p12 = scmp.ne.s32.totalorder %s74_s11, %s192_s20  ;;  %p201_p4 = scmp.lt.s32.totalorder %s192_s20, %s192_s20 }
  0x18   : > { %p195_p13 = pnand %p193_p12, %p181_p7  ;;  %p202_p3 = por %p201_p4, %p200_p1 }
  0x1a   : > { %p196_p0 = pneg %p195_p13 }
  0x1c   : > { %p203_p2 = pnand %p202_p3, %p196_p0 }
  0x1e   : > { %206 = shalt.err (!%p203_p2)
}
  0x1f   : > { %164 = dma.hbm_to_vmem [thread:$0]  (!%p283_p5), %s340_s0, 128, %s74_s11, [#allocation3]  }
  0x20   : > { %p348_p6 = scmp.ne.s32.totalorder %s345_s8, 0 }
  0x21   : > { %p349_p8 = scmp.ne.s32.totalorder (!%p348_p6), %s346_s9, 0 }
  0x22   : > { %86 = sbr.rel (%p348_p6) target bundleno = 67 (0x43), region = 24 }
  0x29   : > { %238 = dma.done.wait (%p349_p8), [#allocation3], 128  }
  0x2a   : > { %240 = vsyncadd (%p349_p8), [#allocation3], 4294967168  ;;  %s250_s23 = smov [#allocation5]   ;;  %p311_p2 = scmp.eq.s32.totalorder %s144_s7, 1  ;;  %v96_v0 = vld [vmem:[#allocation2] sm:$0xff] }
  0x2b   : > { %s105_s24 = sshll.u32 %s250_s23, 4  ;;  %97 = vst [vmem:[#allocation5] sm:$0xff] %v96_v0  ;;  %s106_s24 = int_to_ptr.vmem [resolvable:$true] %s105_s24 }
  0x2c   : > { %s207_s26 = scalar_lea.vmem %s106_s24, 128  ;;  %p214_p9 = scmp.lt.s32.totalorder %s106_s24, %s106_s24 }
  0x2d   : > { %p208_p3 = scmp.ne.s32.totalorder %s106_s24, %s207_s26  ;;  %p215_p10 = scmp.lt.s32.totalorder %s207_s26, %s207_s26 }
  0x2f   : > { %p209_p5 = pnand %p208_p3, %p311_p2  ;;  %p216_p11 = por %p215_p10, %p214_p9 }
  0x31   : > { %p210_p7 = pneg %p209_p5 }
  0x33   : > { %p217_p12 = pnand %p216_p11, %p210_p7 }
  0x35   : > { %220 = shalt.err (!%p217_p12)
}
  0x36   : > { %s221_s29 = scalar_lea.hbm %s341_s1, 128 }
  0x37   : > { %p222_p13 = scmp.ne.s32.totalorder %s341_s1, %s221_s29  ;;  %p227_p4 = scmp.lt.u32.totalorder %s221_s29, %s341_s1 }
  0x39   : > { %p223_p0 = pnand %p222_p13, %p311_p2 }
  0x3b   : > { %p224_p1 = pneg %p223_p0 }
  0x3d   : > { %p229_p6 = pnand %p227_p4, %p224_p1 }
  0x3f   : > { %232 = shalt.err (!%p229_p6)
}
  0x40   : > { %158 = dma.vmem_to_hbm [thread:$0]  (%p311_p2), %s106_s24, 128, %s341_s1, [#allocation4]  }
  0x41   : > { %242 = dma.done.wait (%p311_p2), [#allocation4], 128  }
  0x42   : > { %244 = vsyncadd (%p311_p2), [#allocation4], 4294967168 }
  0x43 PF: > { %s13_s6 = sadd.s32 1, %s247_s6  }
  0x44   : > { %p10_p8 = scmp.ge.s32.totalorder %s13_s6, 4  }
  0x46   :  { %12 = sbr.rel (!%p10_p8) target bundleno = 2 (0x2), region = 53 }
  0x4d   :  { %118 = vsyncpa [#allocation3], 1 }
  0x4e   :  { %120 = vsyncpa [#allocation3 + $0x1], 1 }
  0x4f   :  { %121 = vsyncpa [#allocation4], 1 }
  0x50   :  { %123 = vsyncpa [#allocation4 + $0x1], 1 }

// kernel: _forward_impl.1
= control target key start
LH: loop header
LB: loop body
LE: loop exit
PB: predicated region body
PF: predicated region fallthrough
CT: control target
= control target key end

     0   :  { %12 = vsyncpa [#allocation3], 0  ;;  %s621_s0 = inlined_call_operand.hbm [shape: f32[8,32], index: 0, kind: input, shape index: {}]   ;;  %s622_s1 = inlined_call_operand.hbm [shape: f32[32,128], index: 1, kind: input, shape index: {}]   ;;  %s623_s2 = inlined_call_operand.hbm [shape: f32[128,128], index: 2, kind: input, shape index: {}]   ;;  %s624_s3 = inlined_call_operand.vmem [shape: f32[1,128], index: 3, kind: input, shape index: {}]   ;;  %s625_s4 = inlined_call_operand.vmem [shape: f32[1,128], index: 4, kind: input, shape index: {}]   ;;  %s626_s5 = inlined_call_operand.hbm [shape: f32[8,128], index: 5, kind: output, shape index: {0}]   ;;  %s627_s6 = inlined_call_operand.hbm [shape: f32[8,128], index: 6, kind: output, shape index: {1}]  }
   0x1   :  { %13 = vsyncpa [#allocation6], 0 }
   0x2   :  { %14 = vsyncpa [#allocation4], 0 }
   0x3   :  { %15 = vsyncpa [#allocation10], 0  ;;  %s504_s21 = smov [#allocation5]   ;;  %s386_s25 = scalar_lea.hbm %s622_s1, 512 }
   0x4   :  { %s31_s22 = sshll.u32 %s504_s21, 4  ;;  %p387_p0 = scmp.ne.s32.totalorder %s622_s1, %s386_s25  ;;  %s32_s22 = int_to_ptr.vmem [resolvable:$true] %s31_s22 }
   0x5   :  { %p390_p1 = scmp.lt.u32.totalorder %s386_s25, %s622_s1 }
   0x7   :  { %p392_p2 = pnand %p390_p1, %p387_p0 }
   0x9   :  { %395 = shalt.err (!%p392_p2)
}
   0xa   :  { %s396_s30 = scalar_lea.vmem %s32_s22, 512  ;;  %p401_p4 = scmp.lt.s32.totalorder %s32_s22, %s32_s22 }
   0xb   :  { %p397_p3 = scmp.ne.s32.totalorder %s32_s22, %s396_s30  ;;  %p402_p5 = scmp.lt.s32.totalorder %s396_s30, %s396_s30 }
   0xd   :  { %p403_p6 = por %p402_p5, %p401_p4 }
   0xf   :  { %p404_p7 = pnand %p403_p6, %p397_p3 }
  0x11   :  { %407 = shalt.err (!%p404_p7)
}
  0x12   :  { %s505_s7 = smov 128   ;;  %s506_s8 = smov 8  }
  0x13   :  { %37 = dma.hbm_to_vmem [thread:$0]  %s622_s1, 512, %s32_s22, [#allocation6], %s505_s7, %s505_s7, %s506_s8  }
  0x14   :  { %s507_s11 = smov [#allocation2]   ;;  %s508_s13 = smov [#allocation7]  }
  0x15   :  { %s22_s12 = sshll.u32 %s507_s11, 4  ;;  %s43_s14 = sshll.u32 %s508_s13, 4  ;;  %s23_s12 = int_to_ptr.vmem [resolvable:$true] %s22_s12  ;;  %s44_s14 = int_to_ptr.vmem [resolvable:$true] %s43_s14 }
  0x16   :  { %s408_s17 = scalar_lea.hbm %s621_s0, 128 }
  0x17   :  { %p409_p8 = scmp.ne.s32.totalorder %s621_s0, %s408_s17  ;;  %p412_p9 = scmp.lt.u32.totalorder %s408_s17, %s621_s0 }
  0x19   :  { %p414_p10 = pnand %p412_p9, %p409_p8 }
  0x1b   :  { %417 = shalt.err (!%p414_p10)
}
  0x1c   :  { %s418_s1 = scalar_lea.vmem %s23_s12, 128  ;;  %p423_p12 = scmp.lt.s32.totalorder %s23_s12, %s23_s12 }
  0x1d   :  { %p419_p11 = scmp.ne.s32.totalorder %s23_s12, %s418_s1  ;;  %p424_p13 = scmp.lt.s32.totalorder %s418_s1, %s418_s1 }
  0x1f   :  { %p425_p0 = por %p424_p13, %p423_p12 }
  0x21   :  { %p426_p1 = pnand %p425_p0, %p419_p11 }
  0x23   :  { %429 = shalt.err (!%p426_p1)
}
  0x24   :  { %25 = dma.hbm_to_vmem [thread:$0]  %s621_s0, 128, %s23_s12, [#allocation3]  }
  0x25   :  { %s430_s26 = scalar_lea.hbm %s623_s2, 2048 }
  0x26   :  { %p431_p2 = scmp.ne.s32.totalorder %s623_s2, %s430_s26  ;;  %p434_p3 = scmp.lt.u32.totalorder %s430_s26, %s623_s2 }
  0x28   :  { %p436_p4 = pnand %p434_p3, %p431_p2 }
  0x2a   :  { %439 = shalt.err (!%p436_p4)
}
  0x2b   :  { %s440_s9 = scalar_lea.vmem %s44_s14, 2048  ;;  %p445_p6 = scmp.lt.s32.totalorder %s44_s14, %s44_s14 }
  0x2c   :  { %p441_p5 = scmp.ne.s32.totalorder %s44_s14, %s440_s9  ;;  %p446_p7 = scmp.lt.s32.totalorder %s440_s9, %s440_s9 }
  0x2e   :  { %p447_p8 = por %p446_p7, %p445_p6 }
  0x30   :  { %p448_p9 = pnand %p447_p8, %p441_p5 }
  0x32   :  { %451 = shalt.err (!%p448_p9)
}
  0x33   :  { %49 = dma.hbm_to_vmem [thread:$0]  %s623_s2, 2048, %s44_s14, [#allocation6], %s505_s7, %s505_s7, %s506_s8  }
  0x34   :  { %496 = dma.done.wait [#allocation3], 128  }
  0x35   :  { %497 = vsyncadd [#allocation3], 4294967168 }
  0x36   :  { %498 = dma.done.wait [#allocation6], 2560  }
  0x37   :  { %499 = vsyncadd [#allocation6], 4294964736  ;;  %v509_v0 = vmov 0.0|0.0   ;;  %vm510_vm0 = vmmov 0   ;;  %v511_v1 = vmov 0.0   ;;  %v64_v2 = vld [vmem:[#allocation5] sm:$0xff] }
  0x38   :  { %346 = vmatprep.subr.bf16.mxu0 %v509_v0  ;;  %308 = vmatprep.mubr.msk.f32.mxu0 %vm510_vm0, %v511_v1  ;;  %v65_v3 = vld [vmem:[#allocation5 + $0x8] sm:$0xff]  ;;  %v66_v4 = vld [vmem:[#allocation5 + $0x10] sm:$0xff]  ;;  %v67_v6 = vld [vmem:[#allocation5 + $0x18] sm:$0xff]  ;;  %vm75_vm1 = vcmask 261120   ;;  %s512_s8 = smov [#allocation9]  }
  0x39   :  { %352 = vmatprep.subr.bf16.mxu1 %v509_v0  ;;  %343 = vmatprep.mubr.msk.f32.mxu1 %vm510_vm0, %v511_v1  ;;  %v347_v5 = vpack.c.bf16 %v65_v3, %v64_v2  ;;  %v151_v7 = vld [vmem:[#allocation7] sm:$0xff]  ;;  %v152_v8 = vld [vmem:[#allocation7 + $0x8] sm:$0xff]  ;;  %v153_v9 = vld [vmem:[#allocation7 + $0x10] sm:$0xff]  ;;  %v350_v11 = vpack.c.bf16 %v67_v6, %v66_v4  ;;  %s261_s11 = sshll.u32 %s512_s8, 4  ;;  %s262_s11 = int_to_ptr.vmem [resolvable:$true] %s261_s11 }
  0x3a   :  { %v154_v10 = vld [vmem:[#allocation7 + $0x18] sm:$0xff]  ;;  %v353_v12 = vpack.c.bf16 %v152_v8, %v151_v7  ;;  %v155_v14 = vld [vmem:[#allocation7 + $0x20] sm:$0xff]  ;;  %v156_v15 = vld [vmem:[#allocation7 + $0x28] sm:$0xff]  ;;  %s452_s12 = scalar_lea.vmem %s262_s11, 128  ;;  %p457_p11 = scmp.lt.s32.totalorder %s262_s11, %s262_s11 }
  0x3b   :  { %348 = vmatpush3.bf16.msra.mxu0 %v347_v5  ;;  %v356_v13 = vpack.c.bf16 %v154_v10, %v153_v9  ;;  %v63_v16 = vld [vmem:[#allocation2] sm:$0xff]  ;;  %v359_v17 = vpack.c.bf16 %v156_v15, %v155_v14  ;;  %v157_v18 = vld [vmem:[#allocation7 + $0x30] sm:$0xff]  ;;  %v159_v21 = vld [vmem:[#allocation7 + $0x40] sm:$0xff]  ;;  %p453_p10 = scmp.ne.s32.totalorder %s262_s11, %s452_s12  ;;  %p458_p12 = scmp.lt.s32.totalorder %s452_s12, %s452_s12 }
  0x3c   :  { %349 = vmatprep.subr.bf16.mxu0 %v509_v0  ;;  %354 = vmatpush3.bf16.msra.mxu1 %v353_v12  ;;  %v158_v19 = vld [vmem:[#allocation7 + $0x38] sm:$0xff]  ;;  %v160_v22 = vld [vmem:[#allocation7 + $0x48] sm:$0xff]  ;;  %v161_v24 = vld [vmem:[#allocation7 + $0x50] sm:$0xff] }
  0x3d   :  { %355 = vmatprep.subr.bf16.mxu1 %v509_v0  ;;  %v362_v20 = vpack.c.bf16 %v158_v19, %v157_v18  ;;  %v365_v23 = vpack.c.bf16 %v160_v22, %v159_v21  ;;  %v162_v25 = vld [vmem:[#allocation7 + $0x58] sm:$0xff]  ;;  %v163_v27 = vld [vmem:[#allocation7 + $0x60] sm:$0xff]  ;;  %v164_v28 = vld [vmem:[#allocation7 + $0x68] sm:$0xff]  ;;  %p459_p13 = por %p458_p12, %p457_p11 }
  0x3e   :  { %v368_v26 = vpack.c.bf16 %v162_v25, %v161_v24  ;;  %v371_v29 = vpack.c.bf16 %v164_v28, %v163_v27  ;;  %v165_v30 = vld [vmem:[#allocation7 + $0x70] sm:$0xff]  ;;  %v166_v31 = vld [vmem:[#allocation7 + $0x78] sm:$0xff] }
  0x3f   :  { %351 = vmatpush3.bf16.msra.mxu0 %v350_v11  ;;  %v374_v32 = vpack.c.bf16 %v166_v31, %v165_v30  ;;  %v275_v33 = vld [vmem:[%s624_s3] ss:$0 sm:$0xff]  ;;  %p460_p0 = pnand %p459_p13, %p453_p10 }
  0x40   :  { %357 = vmatpush3.bf16.msra.mxu1 %v356_v13 }
  0x41   :  { %358 = vmatprep.subr.bf16.mxu1 %v509_v0 }
  0x42   :  { %309 = vmatmul.mubr.msk.f32.vlgmr.msra.gmra.mrb[0].mxu0 %vm75_vm1, %v63_v16 }
  0x44   :  { %360 = vmatpush3.bf16.msra.mxu1 %v359_v17 }
  0x45   :  { %361 = vmatprep.subr.bf16.mxu1 %v509_v0 }
  0x48   :  { %363 = vmatpush3.bf16.msra.mxu1 %v362_v20 }
  0x49   :  { %364 = vmatprep.subr.bf16.mxu1 %v509_v0 }
  0x4c   :  { %366 = vmatpush3.bf16.msra.mxu1 %v365_v23 }
  0x4d   :  { %367 = vmatprep.subr.bf16.mxu1 %v509_v0 }
  0x50   :  { %369 = vmatpush3.bf16.msra.mxu1 %v368_v26 }
  0x51   :  { %370 = vmatprep.subr.bf16.mxu1 %v509_v0 }
  0x54   :  { %372 = vmatpush3.bf16.msra.mxu1 %v371_v29 }
  0x55   :  { %373 = vmatprep.subr.bf16.mxu1 %v509_v0 }
  0x58   :  { %375 = vmatpush3.bf16.msra.mxu1 %v374_v32 }
 0x115   :  { %v145_v34 = vpop.f32.mrb[0].mxu0 }
 0x116   :  { %v146_v35 = vadd.f32 %v275_v33, %v145_v34  ;;  %v310_v36 = vpop.f32.mrb[1].mxu0 }
 0x118   :  { %v149_v37 = vmax.f32 %v146_v35, 0.0 }
 0x11a   :  { %150 = vst [vmem:[#allocation9] sm:$0xff] %v149_v37  ;;  %344 = vmatmul.mubr.f32.vlgmr.msra.gmra.mrb[0].mxu1 %v149_v37 }
 0x11b   :  { %463 = shalt.err (!%p460_p0)
}
 0x11c   :  { %s464_s3 = scalar_lea.hbm %s627_s6, 128 }
 0x11d   :  { %p465_p1 = scmp.ne.s32.totalorder %s627_s6, %s464_s3  ;;  %p468_p2 = scmp.lt.u32.totalorder %s464_s3, %s627_s6 }
 0x11f   :  { %p470_p3 = pnand %p468_p2, %p465_p1 }
 0x121   :  { %473 = shalt.err (!%p470_p3)
}
 0x122   :  { %264 = dma.vmem_to_hbm [thread:$0]  %s262_s11, 128, %s627_s6, [#allocation10]   ;;  %v277_v38 = vld [vmem:[%s625_s4] ss:$0 sm:$0xff] }
 0x123   :  { %s513_s22 = smov [#allocation8]  }
 0x124   :  { %s251_s23 = sshll.u32 %s513_s22, 4  ;;  %s252_s23 = int_to_ptr.vmem [resolvable:$true] %s251_s23 }
 0x125   :  { %s474_s24 = scalar_lea.vmem %s252_s23, 128  ;;  %p479_p5 = scmp.lt.s32.totalorder %s252_s23, %s252_s23 }
 0x126   :  { %p475_p4 = scmp.ne.s32.totalorder %s252_s23, %s474_s24  ;;  %p480_p6 = scmp.lt.s32.totalorder %s474_s24, %s474_s24 }
 0x128   :  { %p481_p7 = por %p480_p6, %p479_p5 }
 0x12a   :  { %p482_p8 = pnand %p481_p7, %p475_p4 }
 0x1ed   :  { %v240_v39 = vpop.f32.mrb[0].mxu1 }
 0x1ee   :  { %v241_v40 = vadd.f32 %v277_v38, %v240_v39  ;;  %v345_v41 = vpop.f32.mrb[1].mxu1 }
 0x1f0   :  { %244 = vst [vmem:[#allocation8] sm:$0xff] %v241_v40 }
 0x1f1   :  { %485 = shalt.err (!%p482_p8)
}
 0x1f2   :  { %s486_s26 = scalar_lea.hbm %s626_s5, 128 }
 0x1f3   :  { %p487_p9 = scmp.ne.s32.totalorder %s626_s5, %s486_s26  ;;  %p490_p10 = scmp.lt.u32.totalorder %s486_s26, %s626_s5 }
 0x1f5   :  { %p492_p11 = pnand %p490_p10, %p487_p9 }
 0x1f7   :  { %495 = shalt.err (!%p492_p11)
}
 0x1f8   :  { %254 = dma.vmem_to_hbm [thread:$0]  %s252_s23, 128, %s626_s5, [#allocation4]  }
 0x1f9   :  { %500 = dma.done.wait [#allocation4], 128  }
 0x1fa   :  { %501 = vsyncadd [#allocation4], 4294967168 }
 0x1fb   :  { %502 = dma.done.wait [#allocation10], 128  }
 0x1fc   :  { %503 = vsyncadd [#allocation10], 4294967168 }
 0x1fd   :  { %271 = vsyncpa [#allocation3], 1 }
 0x1fe   :  { %272 = vsyncpa [#allocation6], 1 }
 0x1ff   :  { %273 = vsyncpa [#allocation4], 1 }
 0x200   :  { %274 = vsyncpa [#allocation10], 1 }

</bundles_post_ra>
